<compile_context>
chip_gen: v5e
topology: v5e:2x2
jax: 0.10.0
libtpu: 0.0.40
codegen_flags: <defaults>
</compile_context>

<pallas_src>
import jax
import jax.numpy as jnp
from jax.experimental import pallas as pl
from jax.experimental.pallas import tpu as pltpu


def _round_up(n, m):
    return (n + m - 1) // m * m


def _disc_kernel(x_ref, w1_ref, b1_ref, w2_ref, b2_ref, o_ref):
    # Layer 1: Linear(in_features, 128) on the MXU; cast x tile to bf16 in-kernel.
    x = x_ref[...].astype(jnp.bfloat16)                                   # (tb, F) bf16
    h = jnp.dot(x, w1_ref[...], preferred_element_type=jnp.float32)      # (tb, H) f32
    h = h + b1_ref[...]                                                   # bias add, VPU
    h = jnp.where(h > 0, h, 0.1 * h)                                      # LeakyReLU(0.1)
    # Layer 2: Linear(128, 1) as (1,H) x (tb,H)^T contraction -> lane-dense (1, tb) logits.
    logit = jax.lax.dot_general(
        w2_ref[...], h, (((1,), (1,)), ((), ())),
        preferred_element_type=jnp.float32) + b2_ref[0, 0]                # (1, tb) f32
    # Numerically stable sigmoid: exp(-|z|) never overflows.
    ez = jnp.exp(-jnp.abs(logit))
    sig = jnp.where(logit >= 0, 1.0, ez) / (1.0 + ez)
    o_ref[...] = sig.astype(o_ref.dtype)                                  # lane-dense store


def discriminator_forward(x, w1, b1, w2, b2, *, block_b=512):
    """x: (B, F); w1: (F, H); b1: (H,) or (1,H); w2: (H,1) or (1,H); b2: scalar-like."""
    B, F = x.shape
    H = w1.shape[1]
    LANE = 128

    # Batch tile: multiple of 128 (unmasked lane-dense stores, clean bf16 packing),
    # big enough to amortize per-step overhead, but split so the grid has >=2 tiles
    # when the batch allows it (dual-TC / megacore parallel sharding).
    block_b = _round_up(block_b, LANE)
    tb = min(block_b, _round_up(B, LANE))
    if B > LANE:
        tb = min(tb, _round_up(pl.cdiv(B, 2), LANE))
    assert tb % LANE == 0
    Bp = _round_up(B, tb)
    grid = (Bp // tb,)

    # Pad only the batch dim (zeros), only when needed; feature dim streams at full width.
    x_in = x if Bp == B else jnp.pad(x, ((0, Bp - B), (0, 0)))

    w1_c = w1.astype(jnp.bfloat16)                           # small, fetched once
    b1_row = jnp.reshape(b1, (1, H)).astype(jnp.float32)
    w2_row = jnp.reshape(w2, (1, H)).astype(jnp.float32)
    b2_s = jnp.reshape(b2, (1, 1)).astype(jnp.float32)

    cost = pl.CostEstimate(
        flops=2 * Bp * F * H + 6 * Bp * H,
        transcendentals=Bp,
        bytes_accessed=Bp * F * x_in.dtype.itemsize + F * H * 2 + 2 * H * 4 + 4 + Bp * 4,
    )

    out = pl.pallas_call(
        _disc_kernel,
        out_shape=jax.ShapeDtypeStruct((1, Bp), jnp.float32),
        grid_spec=pltpu.PrefetchScalarGridSpec(
            num_scalar_prefetch=0,
            grid=grid,
            in_specs=[
                pl.BlockSpec((tb, F), lambda i: (i, 0)),              # x batch tile (native dtype)
                pl.BlockSpec((F, H), lambda i: (0, 0)),               # W1 bf16, VMEM resident
                pl.BlockSpec((1, H), lambda i: (0, 0)),               # b1 row (f32)
                pl.BlockSpec((1, H), lambda i: (0, 0)),               # w2 row (f32)
                pl.BlockSpec(memory_space=pltpu.MemorySpace.SMEM),    # b2 scalar in SMEM
            ],
            out_specs=pl.BlockSpec((1, tb), lambda i: (0, i)),        # lane-dense output
        ),
        compiler_params=pltpu.CompilerParams(
            dimension_semantics=("parallel",),                        # batch tiles -> both TCs
        ),
        cost_estimate=cost,
    )(x_in, w1_c, b1_row, w2_row, b2_s)

    return out.reshape(Bp, 1)[:B]


def init_params(key, in_features, hidden=128):
    # Mimics nn.Linear's uniform(-1/sqrt(fan_in), 1/sqrt(fan_in)) init.
    k1, k2, k3, k4 = jax.random.split(key, 4)
    bound1 = 1.0 / jnp.sqrt(in_features)
    bound2 = 1.0 / jnp.sqrt(hidden)
    w1 = jax.random.uniform(k1, (in_features, hidden), jnp.float32, -bound1, bound1)
    b1 = jax.random.uniform(k2, (1, hidden), jnp.float32, -bound1, bound1)
    w2 = jax.random.uniform(k3, (hidden, 1), jnp.float32, -bound2, bound2)
    b2 = jax.random.uniform(k4, (1, 1), jnp.float32, -bound2, bound2)
    return w1, b1, w2, b2


def reference_forward(x, w1, b1, w2, b2):
    h = x @ w1 + jnp.reshape(b1, (1, -1))
    h = jnp.where(h > 0, h, 0.1 * h)
    logit = h @ jnp.reshape(w2, (-1, 1)) + jnp.reshape(b2, (1, 1))
    return jax.nn.sigmoid(logit)


if __name__ == "__main__":
    key = jax.random.PRNGKey(0)
    kx, kp = jax.random.split(key)

    in_features = 784   # flattened 28x28 MNIST image, as in the original GAN
    batch = 64

    x = jax.random.normal(kx, (batch, in_features), jnp.float32)
    w1, b1, w2, b2 = init_params(kp, in_features)

    out = discriminator_forward(x, w1, b1, w2, b2)
    out = jax.block_until_ready(out)
    assert out.shape == (batch, 1)

    # Reference mimicking the kernel's bf16 matmul inputs (f32 accumulation) -> tight check.
    ref_bf16 = reference_forward(
        x.astype(jnp.bfloat16).astype(jnp.float32),
        w1.astype(jnp.bfloat16).astype(jnp.float32), b1, w2, b2)
    # Pure f32 reference -> loose check covering the bf16 input rounding.
    ref_f32 = reference_forward(x, w1, b1, w2, b2)

    assert jnp.allclose(out, ref_bf16, atol=5e-3, rtol=5e-3)
    assert jnp.allclose(out, ref_f32, atol=2e-2, rtol=2e-2)
    assert bool(jnp.all((out >= 0.0) & (out <= 1.0)))

    print("KERNEL_OK")
</pallas_src>

<mosaic_0001>
module attributes {stable_mosaic.version = 11 : i64} {
  func.func @_disc_kernel(%arg0: i32, %arg1: memref<128x784xf32, #tpu.memory_space<vmem>>, %arg2: memref<784x128xbf16, #tpu.memory_space<vmem>>, %arg3: memref<1x128xf32, #tpu.memory_space<vmem>>, %arg4: memref<1x128xf32, #tpu.memory_space<vmem>>, %arg5: memref<1x1xf32, #tpu.memory_space<smem>>, %arg6: memref<1x128xf32, #tpu.memory_space<vmem>>) attributes {dimension_semantics = [#tpu.dimension_semantics<parallel>], iteration_bounds = array<i64: 1>, scalar_prefetch = 0 : i64, scratch_operands = 0 : i64, tpu.core_type = #tpu.core_type<tc>, window_params = [{transform_indices = @transform_0, window_bounds = array<i64: 128, 784>}, {pipeline_mode = #tpu.pipeline_mode<synchronous>, transform_indices = @transform_1, window_bounds = array<i64: 784, 128>}, {pipeline_mode = #tpu.pipeline_mode<synchronous>, transform_indices = @transform_2, window_bounds = array<i64: 1, 128>}, {pipeline_mode = #tpu.pipeline_mode<synchronous>, transform_indices = @transform_3, window_bounds = array<i64: 1, 128>}, {transform_indices = @transform_4, window_bounds = array<i64: 1, 1>}, {transform_indices = @transform_5, window_bounds = array<i64: 1, 128>}]} {
    %c0 = arith.constant 0 : index
    %c0_0 = arith.constant 0 : index
    %0 = vector.load %arg1[%c0, %c0_0] : memref<128x784xf32, #tpu.memory_space<vmem>>, vector<128x784xf32>
    %1 = arith.truncf %0 : vector<128x784xf32> to vector<128x784xbf16>
    %c0_1 = arith.constant 0 : index
    %c0_2 = arith.constant 0 : index
    %2 = vector.load %arg2[%c0_1, %c0_2] : memref<784x128xbf16, #tpu.memory_space<vmem>>, vector<784x128xbf16>
    %cst = arith.constant dense<0.000000e+00> : vector<128x128xf32>
    %3 = tpu.matmul %1, %2, %cst {dimension_numbers = #tpu.dot_dimension_numbers<[1], [0], [0], [1], [0, 0, 1, 1], [], []>} : vector<128x784xbf16>, vector<784x128xbf16>, vector<128x128xf32> -> vector<128x128xf32>
    %c0_3 = arith.constant 0 : index
    %c0_4 = arith.constant 0 : index
    %4 = vector.load %arg3[%c0_3, %c0_4] : memref<1x128xf32, #tpu.memory_space<vmem>>, vector<1x128xf32>
    %5 = vector.broadcast %4 : vector<1x128xf32> to vector<128x128xf32>
    %6 = arith.addf %3, %5 : vector<128x128xf32>
    %cst_5 = arith.constant 0.000000e+00 : f32
    %7 = vector.broadcast %cst_5 : f32 to vector<128x128xf32>
    %8 = arith.cmpf ogt, %6, %7 : vector<128x128xf32>
    %cst_6 = arith.constant 1.000000e-01 : f32
    %9 = vector.broadcast %cst_6 : f32 to vector<128x128xf32>
    %10 = arith.mulf %9, %6 : vector<128x128xf32>
    %11 = arith.select %8, %6, %10 : vector<128x128xi1>, vector<128x128xf32>
    %c0_7 = arith.constant 0 : index
    %c0_8 = arith.constant 0 : index
    %12 = vector.load %arg4[%c0_7, %c0_8] : memref<1x128xf32, #tpu.memory_space<vmem>>, vector<1x128xf32>
    %cst_9 = arith.constant dense<0.000000e+00> : vector<1x128xf32>
    %13 = tpu.matmul %12, %11, %cst_9 {dimension_numbers = #tpu.dot_dimension_numbers<[1], [1], [0], [0], [0, 0, 1, 0], [], []>} : vector<1x128xf32>, vector<128x128xf32>, vector<1x128xf32> -> vector<1x128xf32>
    %c0_10 = arith.constant 0 : index
    %c0_11 = arith.constant 0 : index
    %14 = memref.load %arg5[%c0_10, %c0_11] : memref<1x1xf32, #tpu.memory_space<smem>>
    %15 = vector.broadcast %14 : f32 to vector<1x128xf32>
    %16 = arith.addf %13, %15 : vector<1x128xf32>
    %17 = math.absf %16 : vector<1x128xf32>
    %cst_12 = arith.constant 0.000000e+00 : f32
    %18 = vector.broadcast %cst_12 : f32 to vector<1x128xf32>
    %19 = arith.subf %18, %17 : vector<1x128xf32>
    %20 = math.exp %19 : vector<1x128xf32>
    %cst_13 = arith.constant 0.000000e+00 : f32
    %21 = vector.broadcast %cst_13 : f32 to vector<1x128xf32>
    %22 = arith.cmpf oge, %16, %21 : vector<1x128xf32>
    %cst_14 = arith.constant 1.000000e+00 : f32
    %23 = vector.broadcast %cst_14 : f32 to vector<1x128xf32>
    %24 = arith.select %22, %23, %20 : vector<1x128xi1>, vector<1x128xf32>
    %cst_15 = arith.constant 1.000000e+00 : f32
    %25 = vector.broadcast %cst_15 : f32 to vector<1x128xf32>
    %26 = arith.addf %25, %20 : vector<1x128xf32>
    %27 = arith.divf %24, %26 : vector<1x128xf32>
    %c0_16 = arith.constant 0 : index
    %c0_17 = arith.constant 0 : index
    %28 = vector.load %arg6[%c0_16, %c0_17] : memref<1x128xf32, #tpu.memory_space<vmem>>, vector<1x128xf32>
    tpu.vector_store %arg6[%c0_16, %c0_17], %27 {strides = array<i32>} : memref<1x128xf32, #tpu.memory_space<vmem>>, vector<1x128xf32>,
    return
  }
  func.func @transform_0(%arg0: i32) -> (i32, i32) {
    %c0_i32 = arith.constant 0 : i32
    %c0_i32_0 = arith.constant 0 : i32
    return %arg0, %c0_i32 : i32, i32
  }
  func.func @transform_1(%arg0: i32) -> (i32, i32) {
    %c0_i32 = arith.constant 0 : i32
    %c0_i32_0 = arith.constant 0 : i32
    %c0_i32_1 = arith.constant 0 : i32
    return %c0_i32, %c0_i32_0 : i32, i32
  }
  func.func @transform_2(%arg0: i32) -> (i32, i32) {
    %c0_i32 = arith.constant 0 : i32
    %c0_i32_0 = arith.constant 0 : i32
    %c0_i32_1 = arith.constant 0 : i32
    return %c0_i32, %c0_i32_0 : i32, i32
  }
  func.func @transform_3(%arg0: i32) -> (i32, i32) {
    %c0_i32 = arith.constant 0 : i32
    %c0_i32_0 = arith.constant 0 : i32
    %c0_i32_1 = arith.constant 0 : i32
    return %c0_i32, %c0_i32_0 : i32, i32
  }
  func.func @transform_4(%arg0: i32) -> (i32, i32) {
    %c0_i32 = arith.constant 0 : i32
    %c0_i32_0 = arith.constant 0 : i32
    %c0_i32_1 = arith.constant 0 : i32
    return %c0_i32, %c0_i32_0 : i32, i32
  }
  func.func @transform_5(%arg0: i32) -> (i32, i32) {
    %c0_i32 = arith.constant 0 : i32
    %c0_i32_0 = arith.constant 0 : i32
    return %c0_i32, %arg0 : i32, i32
  }
}

</mosaic_0001>

<bundles_post_ra>
// kernel: tpu_custom_call.1
= control target key start
LH: loop header
LB: loop body
LE: loop exit
PB: predicated region body
PF: predicated region fallthrough
CT: control target
= control target key end

     0   :  { %s2023_s0 = inlined_call_operand.vmem [shape: f32[128,784], index: 0, kind: input, shape index: {}]   ;;  %s2024_s1 = inlined_call_operand.vmem [shape: bf16[784,128], index: 1, kind: input, shape index: {}]   ;;  %s2025_s2 = inlined_call_operand.vmem [shape: f32[1,128], index: 2, kind: input, shape index: {}]   ;;  %s2026_s3 = inlined_call_operand.vmem [shape: f32[1,128], index: 3, kind: input, shape index: {}]   ;;  %s2027_s4 = inlined_call_operand.<no memory space> [shape: f32[1,1], index: 4, kind: input, shape index: {}]   ;;  %s2028_s5 = inlined_call_operand.hbm [shape: f32[1,128], index: 5, kind: output, shape index: {}]  }
   0x1   :  { %v1276_v0 = vld [vmem:[%s2024_s1 + $0x38] sm:$0xff]  ;;  %v1275_v3 = vld [vmem:[%s2024_s1 + $0x30] sm:$0xff]  ;;  %v1274_v6 = vld [vmem:[%s2024_s1 + $0x28] sm:$0xff] }
   0x2   :  { %v1284_v1 = vld [vmem:[%s2024_s1 + $0x78] sm:$0xff]  ;;  %612 = vmatpush.bf16.msra.mxu0 %v1276_v0  ;;  %1318 = vmatpush.bf16.msra.mxu3 %v1276_v0  ;;  %v1283_v4 = vld [vmem:[%s2024_s1 + $0x70] sm:$0xff]  ;;  %v1282_v7 = vld [vmem:[%s2024_s1 + $0x68] sm:$0xff] }
   0x3   :  { %v1292_v2 = vld [vmem:[%s2024_s1 + $0xb8] sm:$0xff]  ;;  %661 = vmatpush.bf16.msra.mxu1 %v1284_v1  ;;  %v1291_v5 = vld [vmem:[%s2024_s1 + $0xb0] sm:$0xff]  ;;  %v1290_v8 = vld [vmem:[%s2024_s1 + $0xa8] sm:$0xff] }
   0x4   :  { %710 = vmatpush.bf16.msra.mxu2 %v1292_v2  ;;  %v1273_v9 = vld [vmem:[%s2024_s1 + $0x20] sm:$0xff] }
   0x5   :  { %v1281_v10 = vld [vmem:[%s2024_s1 + $0x60] sm:$0xff] }
   0x6   :  { %613 = vmatpush.bf16.msra.mxu0 %v1275_v3  ;;  %1319 = vmatpush.bf16.msra.mxu3 %v1275_v3  ;;  %v1289_v11 = vld [vmem:[%s2024_s1 + $0xa0] sm:$0xff] }
   0x7   :  { %662 = vmatpush.bf16.msra.mxu1 %v1283_v4 }
   0x8   :  { %711 = vmatpush.bf16.msra.mxu2 %v1291_v5 }
   0xa   :  { %614 = vmatpush.bf16.msra.mxu0 %v1274_v6  ;;  %1320 = vmatpush.bf16.msra.mxu3 %v1274_v6 }
   0xb   :  { %663 = vmatpush.bf16.msra.mxu1 %v1282_v7 }
   0xc   :  { %712 = vmatpush.bf16.msra.mxu2 %v1290_v8 }
   0xd   :  { %11 = vsyncpa [#allocation4], 0  ;;  %v1272_v12 = vld [vmem:[%s2024_s1 + $0x18] sm:$0xff]  ;;  %v1271_v15 = vld [vmem:[%s2024_s1 + $0x10] sm:$0xff]  ;;  %vm587_vm0 = vcmask 130048   ;;  %s1056_s13 = sshll.u32 %s2028_s5, 4  ;;  %s1057_s13 = int_to_ptr.hbm [resolvable:$true] %s1056_s13 }
   0xe   :  { %615 = vmatpush.bf16.msra.mxu0 %v1273_v9  ;;  %1321 = vmatpush.bf16.msra.mxu3 %v1273_v9  ;;  %v1280_v13 = vld [vmem:[%s2024_s1 + $0x58] sm:$0xff]  ;;  %v1279_v16 = vld [vmem:[%s2024_s1 + $0x50] sm:$0xff]  ;;  %v1270_v18 = vld [vmem:[%s2024_s1 + $0x8] sm:$0xff] }
   0xf   :  { %664 = vmatpush.bf16.msra.mxu1 %v1281_v10  ;;  %v1288_v14 = vld [vmem:[%s2024_s1 + $0x98] sm:$0xff]  ;;  %v1287_v17 = vld [vmem:[%s2024_s1 + $0x90] sm:$0xff]  ;;  %v1278_v19 = vld [vmem:[%s2024_s1 + $0x48] sm:$0xff] }
  0x10   :  { %713 = vmatpush.bf16.msra.mxu2 %v1289_v11  ;;  %v1286_v20 = vld [vmem:[%s2024_s1 + $0x88] sm:$0xff]  ;;  %v1269_v21 = vld [vmem:[%s2024_s1] sm:$0xff]  ;;  %v30_v25 = vld [vmem:[%s2023_s0 + $0x38] sm:$0xff] }
  0x11   :  { %v1277_v22 = vld [vmem:[%s2024_s1 + $0x40] sm:$0xff]  ;;  %v58_v27 = vld [vmem:[%s2023_s0 + $0x118] sm:$0xff]  ;;  %v24_v28 = vld [vmem:[%s2023_s0 + $0x8] sm:$0xff] }
  0x12   :  { %616 = vmatpush.bf16.msra.mxu0 %v1272_v12  ;;  %1322 = vmatpush.bf16.msra.mxu3 %v1272_v12  ;;  %v1285_v23 = vld [vmem:[%s2024_s1 + $0x80] sm:$0xff]  ;;  %v25_v30 = vld [vmem:[%s2023_s0 + $0x10] sm:$0xff]  ;;  %v32_v31 = vld [vmem:[%s2023_s0 + $0x48] sm:$0xff] }
  0x13   :  { %665 = vmatpush.bf16.msra.mxu1 %v1280_v13  ;;  %v23_v24 = vld [vmem:[%s2023_s0] sm:$0xff]  ;;  %v1308_v32 = vld [vmem:[%s2024_s1 + $0x138] sm:$0xff]  ;;  %v137_v36 = vpack.c.bf16 %v32_v31, %v25_v30  ;;  %v1307_v37 = vld [vmem:[%s2024_s1 + $0x130] sm:$0xff] }
  0x14   :  { %714 = vmatpush.bf16.msra.mxu2 %v1288_v14  ;;  %v51_v26 = vld [vmem:[%s2023_s0 + $0xe0] sm:$0xff]  ;;  %v135_v33 = vpack.c.bf16 %v30_v25, %v23_v24  ;;  %v1306_v38 = vld [vmem:[%s2024_s1 + $0x128] sm:$0xff]  ;;  %v37_v40 = vld [vmem:[%s2023_s0 + $0x70] sm:$0xff] }
  0x15   :  { %v31_v29 = vld [vmem:[%s2023_s0 + $0x40] sm:$0xff]  ;;  %v149_v34 = vpack.c.bf16 %v58_v27, %v51_v26  ;;  %v44_v41 = vld [vmem:[%s2023_s0 + $0xa8] sm:$0xff]  ;;  %v65_v42 = vld [vmem:[%s2023_s0 + $0x150] sm:$0xff] }
  0x16   :  { %617 = vmatpush.bf16.msra.mxu0 %v1271_v15  ;;  %1323 = vmatpush.bf16.msra.mxu3 %v1271_v15  ;;  %v136_v35 = vpack.c.bf16 %v31_v29, %v24_v28  ;;  %v1305_v39 = vld [vmem:[%s2024_s1 + $0x120] sm:$0xff]  ;;  %v72_v43 = vld [vmem:[%s2023_s0 + $0x188] sm:$0xff]  ;;  %v38_v44 = vld [vmem:[%s2023_s0 + $0x78] sm:$0xff]  ;;  %v142_v49 = vpack.c.bf16 %v44_v41, %v37_v40 }
  0x17   :  { %666 = vmatpush.bf16.msra.mxu1 %v1279_v16  ;;  %v45_v45 = vld [vmem:[%s2023_s0 + $0xb0] sm:$0xff]  ;;  %v39_v46 = vld [vmem:[%s2023_s0 + $0x80] sm:$0xff]  ;;  %v46_v47 = vld [vmem:[%s2023_s0 + $0xb8] sm:$0xff]  ;;  %v156_v50 = vpack.c.bf16 %v72_v43, %v65_v42 }
  0x18   :  { %715 = vmatpush.bf16.msra.mxu2 %v1287_v17  ;;  %v1304_v48 = vld [vmem:[%s2024_s1 + $0x118] sm:$0xff]  ;;  %v143_v51 = vpack.c.bf16 %v45_v45, %v38_v44  ;;  %v144_v52 = vpack.c.bf16 %v46_v47, %v39_v46  ;;  %v1303_v53 = vld [vmem:[%s2024_s1 + $0x110] sm:$0xff]  ;;  %v1302_v54 = vld [vmem:[%s2024_s1 + $0x108] sm:$0xff] }
  0x19   :  { %v1301_v55 = vld [vmem:[%s2024_s1 + $0x100] sm:$0xff]  ;;  %v86_v57 = vld [vmem:[%s2023_s0 + $0x1f8] sm:$0xff]  ;;  %v52_v58 = vld [vmem:[%s2023_s0 + $0xe8] sm:$0xff] }
  0x1a   :  { %618 = vmatpush.bf16.msra.mxu0 %v1270_v18  ;;  %1324 = vmatpush.bf16.msra.mxu3 %v1270_v18  ;;  %v79_v56 = vld [vmem:[%s2023_s0 + $0x1c0] sm:$0xff]  ;;  %v34_v60 = vld [vmem:[%s2023_s0 + $0x58] sm:$0xff]  ;;  %v53_v62 = vld [vmem:[%s2023_s0 + $0xf0] sm:$0xff] }
  0x1b   :  { %667 = vmatpush.bf16.msra.mxu1 %v1278_v19  ;;  %v27_v59 = vld [vmem:[%s2023_s0 + $0x20] sm:$0xff]  ;;  %v60_v63 = vld [vmem:[%s2023_s0 + $0x128] sm:$0xff]  ;;  %v163_v0 = vpack.c.bf16 %v86_v57, %v79_v56  ;;  %v1300_v4 = vld [vmem:[%s2024_s1 + $0xf8] sm:$0xff] }
  0x1c   :  { %716 = vmatpush.bf16.msra.mxu2 %v1286_v20  ;;  %v59_v61 = vld [vmem:[%s2023_s0 + $0x120] sm:$0xff]  ;;  %v139_v1 = vpack.c.bf16 %v34_v60, %v27_v59  ;;  %v151_v3 = vpack.c.bf16 %v60_v63, %v53_v62  ;;  %v1316_v6 = vld [vmem:[%s2024_s1 + $0x178] sm:$0xff]  ;;  %v1299_v7 = vld [vmem:[%s2024_s1 + $0xf0] sm:$0xff] }
  0x1d   :  { %v150_v2 = vpack.c.bf16 %v59_v61, %v52_v58  ;;  %v1572_v5 = vld [vmem:[%s2024_s1 + $0x180] sm:$0xff]  ;;  %v1298_v8 = vld [vmem:[%s2024_s1 + $0xe8] sm:$0xff]  ;;  %v93_v9 = vld [vmem:[%s2023_s0 + $0x230] sm:$0xff] }
  0x1e   :  { %619 = vmatpush.bf16.msra.mxu0 %v1269_v21  ;;  %1325 = vmatpush.bf16.msra.mxu3 %v1269_v21  ;;  %v100_v10 = vld [vmem:[%s2023_s0 + $0x268] sm:$0xff]  ;;  %v66_v11 = vld [vmem:[%s2023_s0 + $0x158] sm:$0xff]  ;;  %v73_v12 = vld [vmem:[%s2023_s0 + $0x190] sm:$0xff] }
  0x1f   :  { %668 = vmatpush.bf16.msra.mxu1 %v1277_v22  ;;  %v41_v13 = vld [vmem:[%s2023_s0 + $0x90] sm:$0xff]  ;;  %v48_v14 = vld [vmem:[%s2023_s0 + $0xc8] sm:$0xff]  ;;  %v67_v15 = vld [vmem:[%s2023_s0 + $0x160] sm:$0xff]  ;;  %v170_v18 = vpack.c.bf16 %v100_v10, %v93_v9  ;;  %v157_v20 = vpack.c.bf16 %v73_v12, %v66_v11 }
  0x20   :  { %717 = vmatpush.bf16.msra.mxu2 %v1285_v23  ;;  %v74_v16 = vld [vmem:[%s2023_s0 + $0x198] sm:$0xff]  ;;  %v1297_v17 = vld [vmem:[%s2024_s1 + $0xe0] sm:$0xff]  ;;  %v146_v19 = vpack.c.bf16 %v48_v14, %v41_v13  ;;  %v1315_v23 = vld [vmem:[%s2024_s1 + $0x170] sm:$0xff] }
  0x21   :  { %620 = vmatmul.bf16.vlgmr.msra.gmra.mxu0 %v135_v33  ;;  %630 = vmatmul.bf16.vlgmr.msra.gmra.mxu3 %v149_v34  ;;  %v158_v21 = vpack.c.bf16 %v74_v16, %v67_v15  ;;  %v1296_v22 = vld [vmem:[%s2024_s1 + $0xd8] sm:$0xff]  ;;  %v1295_v24 = vld [vmem:[%s2024_s1 + $0xd0] sm:$0xff]  ;;  %v1294_v25 = vld [vmem:[%s2024_s1 + $0xc8] sm:$0xff] }
  0x22   :  { %808 = vmatpush.bf16.msrb.mxu0 %v1308_v32  ;;  %669 = vmatmul.bf16.vlgmr.msra.gmra.mxu1 %v136_v35  ;;  %v107_v26 = vld [vmem:[%s2023_s0 + $0x2a0] sm:$0xff]  ;;  %v114_v27 = vld [vmem:[%s2023_s0 + $0x2d8] sm:$0xff]  ;;  %v80_v28 = vld [vmem:[%s2023_s0 + $0x1c8] sm:$0xff] }
  0x23   :  { %718 = vmatmul.bf16.vlgmr.msra.gmra.mxu2 %v137_v36  ;;  %759 = vmatpush.bf16.msrb.mxu3 %v1300_v4  ;;  %v87_v29 = vld [vmem:[%s2023_s0 + $0x200] sm:$0xff]  ;;  %v62_v31 = vld [vmem:[%s2023_s0 + $0x138] sm:$0xff]  ;;  %v81_v32 = vld [vmem:[%s2023_s0 + $0x1d0] sm:$0xff]  ;;  %v177_v35 = vpack.c.bf16 %v114_v27, %v107_v26 }
  0x24   :  { %1334 = vmatpush.bf16.msrb.mxu2 %v1572_v5  ;;  %1326 = vmatpush.bf16.msrb.mxu1 %v1316_v6  ;;  %v55_v30 = vld [vmem:[%s2023_s0 + $0x100] sm:$0xff]  ;;  %v88_v33 = vld [vmem:[%s2023_s0 + $0x208] sm:$0xff]  ;;  %v121_v41 = vld [vmem:[%s2023_s0 + $0x310] sm:$0xff] }
  0x25   :  { %v1293_v34 = vld [vmem:[%s2024_s1 + $0xc0] sm:$0xff]  ;;  %v153_v36 = vpack.c.bf16 %v62_v31, %v55_v30  ;;  %v128_v42 = vld [vmem:[%s2023_s0 + $0x348] sm:$0xff]  ;;  %v94_v43 = vld [vmem:[%s2023_s0 + $0x238] sm:$0xff] }
  0x26   :  { %809 = vmatpush.bf16.msrb.mxu0 %v1307_v37  ;;  %v164_v37 = vpack.c.bf16 %v87_v29, %v80_v28  ;;  %v1313_v40 = vld [vmem:[%s2024_s1 + $0x160] sm:$0xff]  ;;  %v69_v44 = vld [vmem:[%s2023_s0 + $0x170] sm:$0xff]  ;;  %v76_v45 = vld [vmem:[%s2023_s0 + $0x1a8] sm:$0xff] }
  0x27   :  { %760 = vmatpush.bf16.msrb.mxu3 %v1299_v7  ;;  %v101_v46 = vld [vmem:[%s2023_s0 + $0x270] sm:$0xff]  ;;  %v95_v47 = vld [vmem:[%s2023_s0 + $0x240] sm:$0xff]  ;;  %v108_v56 = vld [vmem:[%s2023_s0 + $0x2a8] sm:$0xff] }
  0x28   :  { %1327 = vmatpush.bf16.msrb.mxu1 %v1315_v23  ;;  %v26_v57 = vld [vmem:[%s2023_s0 + $0x18] sm:$0xff]  ;;  %v33_v58 = vld [vmem:[%s2023_s0 + $0x50] sm:$0xff]  ;;  %v83_v59 = vld [vmem:[%s2023_s0 + $0x1e0] sm:$0xff] }
  0x29   :  { %v90_v60 = vld [vmem:[%s2023_s0 + $0x218] sm:$0xff]  ;;  %v115_v61 = vld [vmem:[%s2023_s0 + $0x2e0] sm:$0xff]  ;;  %v109_v62 = vld [vmem:[%s2023_s0 + $0x2b0] sm:$0xff] }
  0x2a   :  { %810 = vmatpush.bf16.msrb.mxu0 %v1306_v38  ;;  %v165_v38 = vpack.c.bf16 %v88_v33, %v81_v32  ;;  %v116_v63 = vld [vmem:[%s2023_s0 + $0x2e8] sm:$0xff]  ;;  %v129_v10 = vld [vmem:[%s2023_s0 + $0x350] sm:$0xff]  ;;  %v123_v11 = vld [vmem:[%s2023_s0 + $0x320] sm:$0xff] }
  0x2b   :  { %761 = vmatpush.bf16.msrb.mxu3 %v1298_v8  ;;  %v179_v4 = vpack.c.bf16 %v116_v63, %v109_v62  ;;  %v40_v7 = vld [vmem:[%s2023_s0 + $0x88] sm:$0xff]  ;;  %v47_v8 = vld [vmem:[%s2023_s0 + $0xc0] sm:$0xff]  ;;  %v130_v12 = vld [vmem:[%s2023_s0 + $0x358] sm:$0xff] }
  0x2c   :  { %v104_v9 = vld [vmem:[%s2023_s0 + $0x288] sm:$0xff]  ;;  %v145_v13 = vpack.c.bf16 %v47_v8, %v40_v7  ;;  %v186_v16 = vpack.c.bf16 %v130_v12, %v123_v11  ;;  %v35_v7 = vld [vmem:[%s2023_s0 + $0x60] sm:$0xff]  ;;  %v70_v8 = vld [vmem:[%s2023_s0 + $0x178] sm:$0xff] }
  0x2e   :  { %811 = vmatpush.bf16.msrb.mxu0 %v1305_v39  ;;  %v1314_v39 = vld [vmem:[%s2024_s1 + $0x168] sm:$0xff] }
  0x2f   :  { %762 = vmatpush.bf16.msrb.mxu3 %v1297_v17  ;;  %1328 = vmatpush.bf16.msrb.mxu1 %v1314_v39  ;;  %v1744_v17 = vld [vmem:[%s2025_s2] ss:$0 sm:$0xff] }
  0x31   :  { %625 = vmatmul.bf16.gmra.mxu0 %v142_v49  ;;  %635 = vmatmul.bf16.gmra.mxu3 %v156_v50  ;;  %v184_v49 = vpack.c.bf16 %v128_v42, %v121_v41  ;;  %v160_v50 = vpack.c.bf16 %v76_v45, %v69_v44  ;;  %v68_v41 = vld [vmem:[%s2023_s0 + $0x168] sm:$0xff]  ;;  %v75_v42 = vld [vmem:[%s2023_s0 + $0x1a0] sm:$0xff] }
  0x32   :  { %812 = vmatpush.bf16.msrb.mxu0 %v1304_v48  ;;  %674 = vmatmul.bf16.gmra.mxu1 %v143_v51  ;;  %v102_v48 = vld [vmem:[%s2023_s0 + $0x278] sm:$0xff]  ;;  %v171_v51 = vpack.c.bf16 %v101_v46, %v94_v43  ;;  %v125_v43 = vld [vmem:[%s2023_s0 + $0x330] sm:$0xff]  ;;  %v132_v44 = vld [vmem:[%s2023_s0 + $0x368] sm:$0xff] }
  0x33   :  { %723 = vmatmul.bf16.gmra.mxu2 %v144_v52  ;;  %763 = vmatpush.bf16.msrb.mxu3 %v1296_v22  ;;  %v172_v52 = vpack.c.bf16 %v102_v48, %v95_v47  ;;  %v42_v22 = vld [vmem:[%s2023_s0 + $0x98] sm:$0xff]  ;;  %v56_v45 = vld [vmem:[%s2023_s0 + $0x108] sm:$0xff]  ;;  %v63_v46 = vld [vmem:[%s2023_s0 + $0x140] sm:$0xff] }
  0x34   :  { %1329 = vmatpush.bf16.msrb.mxu1 %v1313_v40  ;;  %v57_v47 = vld [vmem:[%s2023_s0 + $0x110] sm:$0xff]  ;;  %v64_v48 = vld [vmem:[%s2023_s0 + $0x148] sm:$0xff] }
  0x36   :  { %813 = vmatpush.bf16.msrb.mxu0 %v1303_v53  ;;  %v1312_v53 = vld [vmem:[%s2024_s1 + $0x158] sm:$0xff] }
  0x37   :  { %764 = vmatpush.bf16.msrb.mxu3 %v1295_v24  ;;  %v43_v24 = vld [vmem:[%s2023_s0 + $0xa0] sm:$0xff] }
  0x38   :  { %1330 = vmatpush.bf16.msrb.mxu1 %v1312_v53 }
  0x3a   :  { %814 = vmatpush.bf16.msrb.mxu0 %v1302_v54  ;;  %v1311_v54 = vld [vmem:[%s2024_s1 + $0x150] sm:$0xff] }
  0x3b   :  { %765 = vmatpush.bf16.msrb.mxu3 %v1294_v25  ;;  %v50_v25 = vld [vmem:[%s2023_s0 + $0xd8] sm:$0xff] }
  0x3c   :  { %1331 = vmatpush.bf16.msrb.mxu1 %v1311_v54  ;;  %v148_v30 = vpack.c.bf16 %v50_v25, %v43_v24 }
  0x3e   :  { %815 = vmatpush.bf16.msrb.mxu0 %v1301_v55  ;;  %v1310_v55 = vld [vmem:[%s2024_s1 + $0x148] sm:$0xff] }
  0x3f   :  { %766 = vmatpush.bf16.msrb.mxu3 %v1293_v34 }
  0x40   :  { %1332 = vmatpush.bf16.msrb.mxu1 %v1310_v55 }
  0x41   :  { %640 = vmatmul.bf16.gmra.mxu3 %v163_v0  ;;  %816 = vmatmul.bf16.vlgmr.msrb.gmra.mxu0 %v139_v1  ;;  %v138_v0 = vpack.c.bf16 %v33_v58, %v26_v57  ;;  %v167_v1 = vpack.c.bf16 %v90_v60, %v83_v59 }
  0x42   :  { %679 = vmatmul.bf16.gmra.mxu1 %v150_v2  ;;  %857 = vmatpush.bf16.msra.mxu0 %v1316_v6  ;;  %v1309_v2 = vld [vmem:[%s2024_s1 + $0x140] sm:$0xff]  ;;  %v122_v6 = vld [vmem:[%s2023_s0 + $0x318] sm:$0xff] }
  0x43   :  { %728 = vmatmul.bf16.gmra.mxu2 %v151_v3  ;;  %v178_v3 = vpack.c.bf16 %v115_v61, %v108_v56  ;;  %v185_v15 = vpack.c.bf16 %v129_v10, %v122_v6  ;;  %v155_v56 = vpack.c.bf16 %v64_v48, %v57_v47  ;;  %v28_v6 = vld [vmem:[%s2023_s0 + $0x28] sm:$0xff]  ;;  %v78_v10 = vld [vmem:[%s2023_s0 + $0x1b8] sm:$0xff] }
  0x44   :  { %1333 = vmatpush.bf16.msrb.mxu1 %v1309_v2 }
  0x46   :  { %858 = vmatpush.bf16.msra.mxu0 %v1315_v23  ;;  %v49_v23 = vld [vmem:[%s2023_s0 + $0xd0] sm:$0xff] }
  0x47   :  { %v147_v29 = vpack.c.bf16 %v49_v23, %v42_v22 }
  0x4a   :  { %859 = vmatpush.bf16.msra.mxu0 %v1314_v39 }
  0x4e   :  { %860 = vmatpush.bf16.msra.mxu0 %v1313_v40 }
  0x51   :  { %645 = vmatmul.bf16.gmra.mxu3 %v170_v18  ;;  %821 = vmatmul.bf16.gmra.mxu0 %v146_v19  ;;  %v54_v18 = vld [vmem:[%s2023_s0 + $0xf8] sm:$0xff]  ;;  %v61_v19 = vld [vmem:[%s2023_s0 + $0x130] sm:$0xff] }
  0x52   :  { %684 = vmatmul.bf16.gmra.mxu1 %v157_v20  ;;  %861 = vmatpush.bf16.msra.mxu0 %v1312_v53  ;;  %v111_v20 = vld [vmem:[%s2023_s0 + $0x2c0] sm:$0xff]  ;;  %v152_v26 = vpack.c.bf16 %v61_v19, %v54_v18 }
  0x53   :  { %733 = vmatmul.bf16.gmra.mxu2 %v158_v21  ;;  %v118_v21 = vld [vmem:[%s2023_s0 + $0x2f8] sm:$0xff] }
  0x54   :  { %v181_v27 = vpack.c.bf16 %v118_v21, %v111_v20 }
  0x56   :  { %862 = vmatpush.bf16.msra.mxu0 %v1311_v54 }
  0x5a   :  { %863 = vmatpush.bf16.msra.mxu0 %v1310_v55  ;;  %v154_v55 = vpack.c.bf16 %v63_v46, %v56_v45 }
  0x5e   :  { %864 = vmatpush.bf16.msra.mxu0 %v1309_v2 }
  0x61   :  { %650 = vmatmul.bf16.gmra.mxu3 %v177_v35  ;;  %826 = vmatmul.bf16.gmra.mxu0 %v153_v36 }
  0x62   :  { %689 = vmatmul.bf16.gmra.mxu1 %v164_v37  ;;  %913 = vmatpush.bf16.msrb.mxu0 %v1572_v5  ;;  %v97_v5 = vld [vmem:[%s2023_s0 + $0x250] sm:$0xff] }
  0x63   :  { %738 = vmatmul.bf16.gmra.mxu2 %v165_v38  ;;  %v174_v14 = vpack.c.bf16 %v104_v9, %v97_v5  ;;  %v77_v5 = vld [vmem:[%s2023_s0 + $0x1b0] sm:$0xff]  ;;  %v71_v9 = vld [vmem:[%s2023_s0 + $0x180] sm:$0xff] }
  0x64   :  { %v161_v18 = vpack.c.bf16 %v77_v5, %v70_v8  ;;  %v162_v19 = vpack.c.bf16 %v78_v10, %v71_v9 }
  0x71   :  { %655 = vmatmul.bf16.gmra.mxu3 %v184_v49  ;;  %831 = vmatmul.bf16.gmra.mxu0 %v160_v50 }
  0x72   :  { %694 = vmatmul.bf16.gmra.mxu1 %v171_v51  ;;  %v159_v51 = vpack.c.bf16 %v75_v42, %v68_v41 }
  0x73   :  { %743 = vmatmul.bf16.gmra.mxu2 %v172_v52  ;;  %v188_v52 = vpack.c.bf16 %v132_v44, %v125_v43 }
  0x81   :  { %767 = vmatmul.bf16.vlgmr.msrb.gmra.mxu3 %v138_v0  ;;  %836 = vmatmul.bf16.gmra.mxu0 %v167_v1 }
  0x82   :  { %699 = vmatmul.bf16.gmra.mxu1 %v178_v3  ;;  %v82_v3 = vld [vmem:[%s2023_s0 + $0x1d8] sm:$0xff] }
  0x83   :  { %748 = vmatmul.bf16.gmra.mxu2 %v179_v4  ;;  %v89_v4 = vld [vmem:[%s2023_s0 + $0x210] sm:$0xff] }
  0x91   :  { %772 = vmatmul.bf16.gmra.mxu3 %v145_v13  ;;  %841 = vmatmul.bf16.gmra.mxu0 %v174_v14  ;;  %v166_v13 = vpack.c.bf16 %v89_v4, %v82_v3  ;;  %v140_v14 = vpack.c.bf16 %v35_v7, %v28_v6 }
  0x92   :  { %704 = vmatmul.bf16.gmra.mxu1 %v185_v15 }
  0x93   :  { %753 = vmatmul.bf16.gmra.mxu2 %v186_v16 }
  0x9e   :  { %v621_v28 = vpop.f32.mrf.mxu0 }
  0x9f   :  { %v622_v31 = vadd.f32 %v1744_v17, %v621_v28  ;;  %v670_v32 = vpop.f32.mrf.mxu1  ;;  %v96_v28 = vld [vmem:[%s2023_s0 + $0x248] sm:$0xff] }
  0xa1   :  { %v671_v33 = vadd.f32 %v670_v32, %v622_v31  ;;  %777 = vmatmul.bf16.gmra.mxu3 %v152_v26  ;;  %846 = vmatmul.bf16.gmra.mxu0 %v181_v27  ;;  %v29_v31 = vld [vmem:[%s2023_s0 + $0x30] sm:$0xff]  ;;  %v36_v32 = vld [vmem:[%s2023_s0 + $0x68] sm:$0xff] }
  0xa2   :  { %870 = vmatmul.bf16.vlgmr.msrb.gmra.mxu1 %v147_v29  ;;  %v103_v29 = vld [vmem:[%s2023_s0 + $0x280] sm:$0xff] }
  0xa3   :  { %1262 = vmatmul.msk.bf16.vlgmr.msrb.gmra.mxu2 %vm587_vm0, %v148_v30  ;;  %v84_v30 = vld [vmem:[%s2023_s0 + $0x1e8] sm:$0xff] }
  0xa4   :  { %v631_v34 = vpop.f32.mrf.mxu3 }
  0xa5   :  { %v632_v15 = vadd.f32 %v1744_v17, %v631_v34  ;;  %v85_v34 = vld [vmem:[%s2023_s0 + $0x1f0] sm:$0xff] }
  0xa6   :  { %v719_v35 = vpop.f32.mrf.mxu2  ;;  %v623_v37 = vpop.f32.mrf.mxu0 }
  0xa7   :  { %v1772_v36 = vadd.f32 %v719_v35, %v671_v33  ;;  %v624_v38 = vadd.f32 %v1744_v17, %v623_v37  ;;  %v672_v39 = vpop.f32.mrf.mxu1  ;;  %v91_v33 = vld [vmem:[%s2023_s0 + $0x220] sm:$0xff]  ;;  %v92_v35 = vld [vmem:[%s2023_s0 + $0x228] sm:$0xff] }
  0xa8   :  { %v168_v43 = vpack.c.bf16 %v91_v33, %v84_v30  ;;  %v169_v44 = vpack.c.bf16 %v92_v35, %v85_v34 }
  0xa9   :  { %v673_v40 = vadd.f32 %v672_v39, %v624_v38  ;;  %v173_v39 = vpack.c.bf16 %v103_v29, %v96_v28 }
  0xac   :  { %v633_v49 = vpop.f32.mrf.mxu3 }
  0xad   :  { %v634_v24 = vadd.f32 %v1744_v17, %v633_v49 }
  0xae   :  { %v721_v50 = vpop.f32.mrf.mxu2  ;;  %v626_v54 = vpop.f32.mrf.mxu0 }
  0xaf   :  { %v1799_v53 = vadd.f32 %v721_v50, %v673_v40  ;;  %v627_v57 = vadd.f32 %v1744_v17, %v626_v54  ;;  %v675_v58 = vpop.f32.mrf.mxu1  ;;  %v141_v40 = vpack.c.bf16 %v36_v32, %v29_v31  ;;  %v110_v54 = vld [vmem:[%s2023_s0 + $0x2b8] sm:$0xff] }
  0xb1   :  { %v676_v59 = vadd.f32 %v675_v58, %v627_v57  ;;  %782 = vmatmul.bf16.gmra.mxu3 %v159_v51  ;;  %851 = vmatmul.bf16.gmra.mxu0 %v188_v52  ;;  %v105_v57 = vld [vmem:[%s2023_s0 + $0x290] sm:$0xff]  ;;  %v99_v58 = vld [vmem:[%s2023_s0 + $0x260] sm:$0xff] }
  0xb2   :  { %875 = vmatmul.bf16.gmra.mxu1 %v154_v55  ;;  %v117_v55 = vld [vmem:[%s2023_s0 + $0x2f0] sm:$0xff] }
  0xb3   :  { %1263 = vmatmul.msk.bf16.gmra.mxu2 %vm587_vm0, %v155_v56  ;;  %v98_v56 = vld [vmem:[%s2023_s0 + $0x258] sm:$0xff] }
  0xb4   :  { %v636_v60 = vpop.f32.mrf.mxu3 }
  0xb5   :  { %v637_v41 = vadd.f32 %v1744_v17, %v636_v60 }
  0xb6   :  { %v724_v61 = vpop.f32.mrf.mxu2  ;;  %v628_v63 = vpop.f32.mrf.mxu0 }
  0xb7   :  { %v1803_v62 = vadd.f32 %v724_v61, %v676_v59  ;;  %v629_v0 = vadd.f32 %v1744_v17, %v628_v63  ;;  %v677_v1 = vpop.f32.mrf.mxu1  ;;  %v106_v59 = vld [vmem:[%s2023_s0 + $0x298] sm:$0xff]  ;;  %v180_v63 = vpack.c.bf16 %v117_v55, %v110_v54 }
  0xb9   :  { %v678_v2 = vadd.f32 %v677_v1, %v629_v0  ;;  %v175_v1 = vpack.c.bf16 %v105_v57, %v98_v56 }
  0xbc   :  { %v638_v11 = vpop.f32.mrf.mxu3 }
  0xbd   :  { %v639_v49 = vadd.f32 %v1744_v17, %v638_v11 }
  0xbe   :  { %v726_v12 = vpop.f32.mrf.mxu2  ;;  %v1916_v30 = vpop.f32.mrf.mxu0 }
  0xbf   :  { %v1831_v16 = vadd.f32 %v726_v12, %v678_v2  ;;  %v680_v20 = vpop.f32.mrf.mxu1  ;;  %v176_v2 = vpack.c.bf16 %v106_v59, %v99_v58  ;;  %v124_v12 = vld [vmem:[%s2023_s0 + $0x328] sm:$0xff] }
  0xc0   :  { %v681_v21 = vadd.f32 %v680_v20, %v632_v15  ;;  %v119_v15 = vld [vmem:[%s2023_s0 + $0x300] sm:$0xff] }
  0xc1   :  { %787 = vmatmul.bf16.gmra.mxu3 %v166_v13  ;;  %865 = vmatmul.bf16.vlgmr.msra.gmra.mxu0 %v140_v14  ;;  %v131_v13 = vld [vmem:[%s2023_s0 + $0x360] sm:$0xff]  ;;  %v112_v14 = vld [vmem:[%s2023_s0 + $0x2c8] sm:$0xff] }
  0xc2   :  { %880 = vmatmul.bf16.gmra.mxu1 %v161_v18  ;;  %v113_v18 = vld [vmem:[%s2023_s0 + $0x2d0] sm:$0xff] }
  0xc3   :  { %1264 = vmatmul.msk.bf16.gmra.mxu2 %vm587_vm0, %v162_v19  ;;  %v120_v19 = vld [vmem:[%s2023_s0 + $0x308] sm:$0xff] }
  0xc4   :  { %v641_v22 = vpop.f32.mrf.mxu3 }
  0xc5   :  { %v642_v4 = vadd.f32 %v1744_v17, %v641_v22  ;;  %v187_v22 = vpack.c.bf16 %v131_v13, %v124_v12 }
  0xc6   :  { %v729_v23 = vpop.f32.mrf.mxu2 }
  0xc7   :  { %v1835_v25 = vadd.f32 %v729_v23, %v681_v21  ;;  %v682_v26 = vpop.f32.mrf.mxu1 }
  0xc8   :  { %v683_v27 = vadd.f32 %v682_v26, %v634_v24  ;;  %v182_v26 = vpack.c.bf16 %v119_v15, %v112_v14 }
  0xcc   :  { %v643_v37 = vpop.f32.mrf.mxu3 }
  0xcd   :  { %v644_v5 = vadd.f32 %v1744_v17, %v643_v37 }
  0xce   :  { %v731_v38 = vpop.f32.mrf.mxu2 }
  0xcf   :  { %v1862_v42 = vadd.f32 %v731_v38, %v683_v27  ;;  %v685_v45 = vpop.f32.mrf.mxu1  ;;  %v183_v27 = vpack.c.bf16 %v120_v19, %v113_v18  ;;  %v126_v38 = vld [vmem:[%s2023_s0 + $0x338] sm:$0xff] }
  0xd0   :  { %v686_v46 = vadd.f32 %v685_v45, %v637_v41  ;;  %v134_v41 = vld [vmem:[%s2023_s0 + $0x378] sm:$0xff] }
  0xd1   :  { %792 = vmatmul.bf16.gmra.mxu3 %v173_v39  ;;  %1261 = vmatmul.msk.bf16.vlgmr.msrb.gmra.mxu0 %vm587_vm0, %v141_v40  ;;  %v133_v39 = vld [vmem:[%s2023_s0 + $0x370] sm:$0xff]  ;;  %v127_v40 = vld [vmem:[%s2023_s0 + $0x340] sm:$0xff] }
  0xd2   :  { %885 = vmatmul.bf16.gmra.mxu1 %v168_v43 }
  0xd3   :  { %1265 = vmatmul.msk.bf16.gmra.mxu2 %vm587_vm0, %v169_v44  ;;  %v1933_v44 = vpop.f32.mrf.mxu0 }
  0xd4   :  { %v646_v47 = vpop.f32.mrf.mxu3 }
  0xd5   :  { %v647_v23 = vadd.f32 %v1744_v17, %v646_v47 }
  0xd6   :  { %v734_v48 = vpop.f32.mrf.mxu2 }
  0xd7   :  { %v1867_v50 = vadd.f32 %v734_v48, %v686_v46  ;;  %v687_v51 = vpop.f32.mrf.mxu1  ;;  %v189_v48 = vpack.c.bf16 %v133_v39, %v126_v38 }
  0xd8   :  { %v688_v52 = vadd.f32 %v687_v51, %v639_v49  ;;  %v190_v49 = vpack.c.bf16 %v134_v41, %v127_v40 }
  0xdb   :  { %v822_v59 = vpop.f32.mrf.mxu0 }
  0xdc   :  { %v648_v60 = vpop.f32.mrf.mxu3 }
  0xdd   :  { %v649_v33 = vadd.f32 %v1744_v17, %v648_v60 }
  0xde   :  { %v736_v61 = vpop.f32.mrf.mxu2 }
  0xdf   :  { %v1887_v0 = vadd.f32 %v736_v61, %v688_v52  ;;  %v690_v3 = vpop.f32.mrf.mxu1 }
  0xe0   :  { %v691_v6 = vadd.f32 %v690_v3, %v642_v4 }
  0xe1   :  { %797 = vmatmul.bf16.gmra.mxu3 %v180_v63 }
  0xe2   :  { %890 = vmatmul.bf16.gmra.mxu1 %v175_v1 }
  0xe3   :  { %1266 = vmatmul.msk.bf16.gmra.mxu2 %vm587_vm0, %v176_v2 }
  0xe4   :  { %v651_v7 = vpop.f32.mrf.mxu3 }
  0xe5   :  { %v652_v46 = vadd.f32 %v1744_v17, %v651_v7 }
  0xe6   :  { %v739_v8 = vpop.f32.mrf.mxu2 }
  0xe7   :  { %v1892_v9 = vadd.f32 %v739_v8, %v691_v6  ;;  %v692_v10 = vpop.f32.mrf.mxu1 }
  0xe8   :  { %v693_v11 = vadd.f32 %v692_v10, %v644_v5 }
  0xec   :  { %v653_v20 = vpop.f32.mrf.mxu3 }
  0xed   :  { %v654_v57 = vadd.f32 %v1744_v17, %v653_v20 }
  0xee   :  { %v741_v21 = vpop.f32.mrf.mxu2 }
  0xef   :  { %v1913_v24 = vadd.f32 %v741_v21, %v693_v11  ;;  %v695_v28 = vpop.f32.mrf.mxu1 }
  0xf0   :  { %v696_v29 = vadd.f32 %v695_v28, %v647_v23 }
  0xf1   :  { %802 = vmatmul.bf16.gmra.mxu3 %v187_v22 }
  0xf2   :  { %895 = vmatmul.bf16.gmra.mxu1 %v182_v26 }
  0xf3   :  { %1267 = vmatmul.msk.bf16.gmra.mxu2 %vm587_vm0, %v183_v27 }
  0xf4   :  { %v656_v31 = vpop.f32.mrf.mxu3 }
  0xf5   :  { %v657_v3 = vadd.f32 %v1744_v17, %v656_v31 }
  0xf6   :  { %v744_v32 = vpop.f32.mrf.mxu2 }
  0xf7   :  { %v1919_v34 = vadd.f32 %v744_v32, %v696_v29  ;;  %v697_v35 = vpop.f32.mrf.mxu1 }
  0xf8   :  { %v698_v37 = vadd.f32 %v697_v35, %v649_v33 }
  0xfc   :  { %v658_v43 = vpop.f32.mrf.mxu3 }
  0xfd   :  { %v659_v11 = vadd.f32 %v1744_v17, %v658_v43 }
  0xfe   :  { %v746_v45 = vpop.f32.mrf.mxu2 }
  0xff   :  { %v1936_v47 = vadd.f32 %v746_v45, %v698_v37  ;;  %v700_v51 = vpop.f32.mrf.mxu1 }
 0x100   :  { %v701_v52 = vadd.f32 %v700_v51, %v652_v46 }
 0x102   :  { %900 = vmatmul.bf16.gmra.mxu1 %v189_v48 }
 0x103   :  { %1268 = vmatmul.msk.bf16.gmra.mxu2 %vm587_vm0, %v190_v49 }
 0x104   :  { %v768_v54 = vpop.f32.mrf.mxu3 }
 0x105   :  { %v1940_v56 = vadd.f32 %v768_v54, %v1772_v36  ;;  %v824_v36 = vpop.f32.mrf.mxu0 }
 0x106   :  { %v749_v55 = vpop.f32.mrf.mxu2 }
 0x107   :  { %v1943_v58 = vadd.f32 %v749_v55, %v701_v52  ;;  %v702_v60 = vpop.f32.mrf.mxu1 }
 0x108   :  { %v703_v61 = vadd.f32 %v702_v60, %v654_v57 }
 0x10c   :  { %v770_v63 = vpop.f32.mrf.mxu3 }
 0x10d   :  { %v1946_v2 = vadd.f32 %v770_v63, %v1799_v53  ;;  %v827_v15 = vpop.f32.mrf.mxu0 }
 0x10e   :  { %v751_v1 = vpop.f32.mrf.mxu2 }
 0x10f   :  { %v1949_v4 = vadd.f32 %v751_v1, %v703_v61  ;;  %v705_v6 = vpop.f32.mrf.mxu1 }
 0x110   :  { %v706_v7 = vadd.f32 %v705_v6, %v657_v3 }
 0x114   :  { %v773_v8 = vpop.f32.mrf.mxu3 }
 0x115   :  { %v774_v10 = vadd.f32 %v773_v8, %v1803_v62  ;;  %v829_v27 = vpop.f32.mrf.mxu0 }
 0x116   :  { %v754_v5 = vpop.f32.mrf.mxu2 }
 0x117   :  { %v1953_v12 = vadd.f32 %v754_v5, %v706_v7  ;;  %v707_v13 = vpop.f32.mrf.mxu1  ;;  %v823_v21 = vadd.f32 %v822_v59, %v774_v10 }
 0x118   :  { %v708_v14 = vadd.f32 %v707_v13, %v659_v11 }
 0x11c   :  { %v775_v53 = vpop.f32.mrf.mxu3 }
 0x11d   :  { %v776_v19 = vadd.f32 %v775_v53, %v1831_v16  ;;  %v832_v39 = vpop.f32.mrf.mxu0 }
 0x11e   :  { %v756_v18 = vpop.f32.mrf.mxu2 }
 0x11f   :  { %v1956_v20 = vadd.f32 %v756_v18, %v708_v14  ;;  %v871_v22 = vpop.f32.mrf.mxu1  ;;  %v825_v29 = vadd.f32 %v824_v36, %v776_v19 }
 0x120   :  { %v872_v23 = vadd.f32 %v871_v22, %v823_v21 }
 0x124   :  { %v778_v26 = vpop.f32.mrf.mxu3 }
 0x125   :  { %v779_v62 = vadd.f32 %v778_v26, %v1835_v25  ;;  %v834_v52 = vpop.f32.mrf.mxu0 }
 0x126   :  { %v920_v28 = vpop.f32.mrf.mxu2 }
 0x127   :  { %v1959_v17 = vadd.f32 %v920_v28, %v872_v23  ;;  %v873_v31 = vpop.f32.mrf.mxu1  ;;  %v828_v38 = vadd.f32 %v827_v15, %v779_v62 }
 0x128   :  { %v874_v32 = vadd.f32 %v873_v31, %v825_v29 }
 0x129   :  { %vm957_vm14 = vcmp.gt.f32.partialorder %v1959_v17, 0.0 }
 0x12c   :  { %v780_v33 = vpop.f32.mrf.mxu3 }
 0x12d   :  { %v781_v35 = vadd.f32 %v780_v33, %v1862_v42  ;;  %v837_v63 = vpop.f32.mrf.mxu0 }
 0x12e   :  { %v922_v37 = vpop.f32.mrf.mxu2 }
 0x12f   :  { %v1962_v16 = vadd.f32 %v922_v37, %v874_v32  ;;  %v876_v40 = vpop.f32.mrf.mxu1  ;;  %v830_v48 = vadd.f32 %v829_v27, %v781_v35 }
 0x130   :  { %v877_v41 = vadd.f32 %v876_v40, %v828_v38 }
 0x131   :  { %vm958_vm13 = vcmp.gt.f32.partialorder %v1962_v16, 0.0 }
 0x134   :  { %v783_v43 = vpop.f32.mrf.mxu3 }
 0x135   :  { %v784_v45 = vadd.f32 %v783_v43, %v1867_v50  ;;  %v839_v10 = vpop.f32.mrf.mxu0 }
 0x136   :  { %v925_v25 = vpop.f32.mrf.mxu2 }
 0x137   :  { %v1965_v46 = vadd.f32 %v925_v25, %v877_v41  ;;  %v878_v49 = vpop.f32.mrf.mxu1  ;;  %v833_v59 = vadd.f32 %v832_v39, %v784_v45 }
 0x138   :  { %v879_v51 = vadd.f32 %v878_v49, %v830_v48 }
 0x139   :  { %vm959_vm12 = vcmp.gt.f32.partialorder %v1965_v46, 0.0 }
 0x13c   :  { %v785_v54 = vpop.f32.mrf.mxu3 }
 0x13d   :  { %v786_v42 = vadd.f32 %v785_v54, %v1887_v0  ;;  %v842_v22 = vpop.f32.mrf.mxu0 }
 0x13e   :  { %v927_v55 = vpop.f32.mrf.mxu2 }
 0x13f   :  { %v1968_v57 = vadd.f32 %v927_v55, %v879_v51  ;;  %v881_v60 = vpop.f32.mrf.mxu1  ;;  %v835_v7 = vadd.f32 %v834_v52, %v786_v42 }
 0x140   :  { %v882_v61 = vadd.f32 %v881_v60, %v833_v59 }
 0x141   :  { %vm960_vm11 = vcmp.gt.f32.partialorder %v1968_v57, 0.0 }
 0x144   :  { %v788_v1 = vpop.f32.mrf.mxu3 }
 0x145   :  { %v789_v50 = vadd.f32 %v788_v1, %v1892_v9 }
 0x146   :  { %v930_v3 = vpop.f32.mrf.mxu2 }
 0x147   :  { %v1971_v6 = vadd.f32 %v930_v3, %v882_v61  ;;  %v883_v36 = vpop.f32.mrf.mxu1  ;;  %v838_v14 = vadd.f32 %v837_v63, %v789_v50 }
 0x148   :  { %v884_v8 = vadd.f32 %v883_v36, %v835_v7 }
 0x149   :  { %vm961_vm10 = vcmp.gt.f32.partialorder %v1971_v6, 0.0 }
 0x14c   :  { %v790_v5 = vpop.f32.mrf.mxu3 }
 0x14d   :  { %v791_v0 = vadd.f32 %v790_v5, %v1913_v24  ;;  %v844_v24 = vpop.f32.mrf.mxu0 }
 0x14e   :  { %v932_v11 = vpop.f32.mrf.mxu2 }
 0x14f   :  { %v1974_v13 = vadd.f32 %v932_v11, %v884_v8  ;;  %v886_v15 = vpop.f32.mrf.mxu1  ;;  %v840_v9 = vadd.f32 %v839_v10, %v791_v0 }
 0x150   :  { %v887_v53 = vadd.f32 %v886_v15, %v838_v14 }
 0x151   :  { %vm962_vm9 = vcmp.gt.f32.partialorder %v1974_v13, 0.0 }
 0x154   :  { %v793_v18 = vpop.f32.mrf.mxu3 }
 0x155   :  { %v847_v35 = vpop.f32.mrf.mxu0 }
 0x156   :  { %v935_v19 = vpop.f32.mrf.mxu2 }
 0x157   :  { %v1976_v21 = vadd.f32 %v935_v19, %v887_v53  ;;  %v888_v23 = vpop.f32.mrf.mxu1  ;;  %v794_v53 = vadd.f32 %v793_v18, %v1919_v34 }
 0x158   :  { %v889_v26 = vadd.f32 %v888_v23, %v840_v9 }
 0x159   :  { %vm963_vm8 = vcmp.gt.f32.partialorder %v1976_v21, 0.0 }
 0x15c   :  { %v795_v27 = vpop.f32.mrf.mxu3 }
 0x15d   :  { %v849_v40 = vpop.f32.mrf.mxu0 }
 0x15e   :  { %v937_v62 = vpop.f32.mrf.mxu2 }
 0x15f   :  { %v1978_v28 = vadd.f32 %v937_v62, %v889_v26  ;;  %v891_v29 = vpop.f32.mrf.mxu1  ;;  %v843_v62 = vadd.f32 %v842_v22, %v794_v53  ;;  %v979_v22 = vmul.f32 0.1, %v1976_v21 }
 0x161   :  { %vm964_vm7 = vcmp.gt.f32.partialorder %v1978_v28, 0.0 }
 0x164   :  { %v798_v31 = vpop.f32.mrf.mxu3 }
 0x165   :  { %v852_v48 = vpop.f32.mrf.mxu0  ;;  %v799_v7 = vadd.f32 %v798_v31, %v1943_v58 }
 0x166   :  { %v940_v32 = vpop.f32.mrf.mxu2 }
 0x167   :  { %v893_v33 = vpop.f32.mrf.mxu1 }
 0x16c   :  { %v800_v38 = vpop.f32.mrf.mxu3 }
 0x16d   :  { %v854_v55 = vpop.f32.mrf.mxu0  ;;  %v801_v60 = vadd.f32 %v800_v38, %v1949_v4 }
 0x16e   :  { %v942_v37 = vpop.f32.mrf.mxu2 }
 0x16f   :  { %v896_v39 = vpop.f32.mrf.mxu1  ;;  %v850_v36 = vadd.f32 %v849_v40, %v801_v60 }
 0x174   :  { %v803_v45 = vpop.f32.mrf.mxu3 }
 0x175   :  { %v804_v54 = vadd.f32 %v803_v45, %v1953_v12  ;;  %v796_v12 = vadd.f32 %v795_v27, %v1936_v47  ;;  %v892_v27 = vadd.f32 %v891_v29, %v843_v62  ;;  %v866_v34 = vpop.f32.mrf.mxu0  ;;  %v977_v45 = vmul.f32 0.1, %v1971_v6 }
 0x176   :  { %v945_v41 = vpop.f32.mrf.mxu2 }
 0x177   :  { %v898_v43 = vpop.f32.mrf.mxu1  ;;  %v853_v61 = vadd.f32 %v852_v48, %v804_v54  ;;  %v845_v19 = vadd.f32 %v844_v24, %v796_v12 }
 0x178   :  { %v899_v10 = vadd.f32 %v898_v43, %v850_v36 }
 0x179   :  { %v894_v26 = vadd.f32 %v893_v33, %v845_v19 }
 0x17b   :  { %v943_v31 = vadd.f32 %v942_v37, %v894_v26  ;;  %v978_v37 = vmul.f32 0.1, %v1974_v13 }
 0x17c   :  { %v805_v51 = vpop.f32.mrf.mxu3 }
 0x17d   :  { %v806_v42 = vadd.f32 %v805_v51, %v1956_v20  ;;  %v848_v20 = vadd.f32 %v847_v35, %v799_v7  ;;  %v941_v35 = vadd.f32 %v940_v32, %v892_v27  ;;  %v982_v40 = vmul.f32 0.1, %v943_v31  ;;  %v868_v32 = vpop.f32.mrf.mxu0 }
 0x17e   :  { %v947_v25 = vpop.f32.mrf.mxu2  ;;  %vm966_vm5 = vcmp.gt.f32.partialorder %v943_v31, 0.0 }
 0x17f   :  { %v901_v49 = vpop.f32.mrf.mxu1  ;;  %v855_v63 = vadd.f32 %v854_v55, %v806_v42  ;;  %v948_v11 = vadd.f32 %v947_v25, %v899_v10  ;;  %v897_v4 = vadd.f32 %v896_v39, %v848_v20  ;;  %v981_v18 = vmul.f32 0.1, %v941_v35 }
 0x180   :  { %v902_v1 = vadd.f32 %v901_v49, %v853_v61  ;;  %v998_v24 = vsel %vm966_vm5, %v943_v31, %v982_v40  ;;  %vm965_vm6 = vcmp.gt.f32.partialorder %v941_v35, 0.0  ;;  %v980_v39 = vmul.f32 0.1, %v1978_v28 }
 0x181   :  { %v946_v9 = vadd.f32 %v945_v41, %v897_v4  ;;  %v984_v58 = vmul.f32 0.1, %v948_v11  ;;  %vm968_vm3 = vcmp.gt.f32.partialorder %v948_v11, 0.0  ;;  %v997_v33 = vsel %vm965_vm6, %v941_v35, %v981_v18 }
 0x182   :  { %v996_v29 = vsel %vm964_vm7, %v1978_v28, %v980_v39  ;;  %v995_v41 = vsel %vm963_vm8, %v1976_v21, %v979_v22  ;;  %v994_v25 = vsel %vm962_vm9, %v1974_v13, %v978_v37  ;;  %v976_v28 = vmul.f32 0.1, %v1968_v57 }
 0x183   :  { %v983_v38 = vmul.f32 0.1, %v946_v9  ;;  %v1000_v47 = vsel %vm968_vm3, %v948_v11, %v984_v58  ;;  %vm967_vm4 = vcmp.gt.f32.partialorder %v946_v9, 0.0  ;;  %v993_v49 = vsel %vm961_vm10, %v1971_v6, %v977_v45 }
 0x184   :  { %v975_v21 = vmul.f32 0.1, %v1965_v46  ;;  %v992_v51 = vsel %vm960_vm11, %v1968_v57, %v976_v28  ;;  %v974_v13 = vmul.f32 0.1, %v1962_v16  ;;  %v973_v55 = vmul.f32 0.1, %v1959_v17 }
 0x185   :  { %v999_v43 = vsel %vm967_vm4, %v946_v9, %v983_v38  ;;  %v915_v48 = vpop.f32.mrf.mxu0  ;;  %v818_v57 = vadd.f32 %v1916_v30, %v1940_v56  ;;  %v1003_v30 = vld [vmem:[%s2026_s3] sm:$0x1]  ;;  %v1005_v56 = vstv %s2027_s4  ;;  %s1367_s3 = smov [#allocation3]  }
 0x186   :  { %v950_v52 = vpop.f32.mrf.mxu2  ;;  %v991_v54 = vsel %vm959_vm12, %v1965_v46, %v975_v21  ;;  %v990_v60 = vsel %vm958_vm13, %v1962_v16, %v974_v13  ;;  %v989_v46 = vsel %vm957_vm14, %v1959_v17, %v973_v55  ;;  %s1054_s4 = sshll.u32 %s1367_s3, 4  ;;  %s1055_s4 = int_to_ptr.vmem [resolvable:$true] %s1054_s4 }
 0x187   :  { %v903_v59 = vpop.f32.mrf.mxu1  ;;  %v951_v8 = vadd.f32 %v950_v52, %v902_v1  ;;  %v820_v52 = vadd.f32 %v1933_v44, %v1946_v2  ;;  %v867_v61 = vadd.f32 %v866_v34, %v818_v57 }
 0x188   :  { %v904_v50 = vadd.f32 %v903_v59, %v855_v63 }
 0x189   :  { %v985_v14 = vmul.f32 0.1, %v951_v8  ;;  %vm969_vm2 = vcmp.gt.f32.partialorder %v951_v8, 0.0  ;;  %v869_v6 = vadd.f32 %v868_v32, %v820_v52  ;;  %v916_v44 = vadd.f32 %v915_v48, %v867_v61 }
 0x18b   :  { %v1001_v23 = vsel %vm969_vm2, %v951_v8, %v985_v14  ;;  %v971_v63 = vmul.f32 0.1, %v916_v44  ;;  %vm955_vm0 = vcmp.gt.f32.partialorder %v916_v44, 0.0 }
 0x18d   :  { %v917_v42 = vpop.f32.mrf.mxu0 }
 0x18e   :  { %v952_v3 = vpop.f32.mrf.mxu2  ;;  %v918_v59 = vadd.f32 %v917_v42, %v869_v6 }
 0x18f   :  { %v953_v5 = vadd.f32 %v952_v3, %v904_v50  ;;  %v987_v50 = vsel %vm955_vm0, %v916_v44, %v971_v63 }
 0x190   :  { %v972_v2 = vmul.f32 0.1, %v918_v59  ;;  %vm956_vm15 = vcmp.gt.f32.partialorder %v918_v59, 0.0 }
 0x191   :  { %vm970_vm1 = vcmp.gt.f32.partialorder %v953_v5, 0.0  ;;  %v986_v0 = vmul.f32 0.1, %v953_v5 }
 0x192   :  { %v988_v1 = vsel %vm956_vm15, %v918_v59, %v972_v2 }
 0x193   :  { %v1002_v15 = vsel %vm970_vm1, %v953_v5, %v986_v0 }
 0x194   :  { %1006 = vmatpush.xpose.msra.mxu3 %v1002_v15 }
 0x198   :  { %1007 = vmatpush.xpose.msra.mxu3 %v1001_v23 }
 0x19c   :  { %1008 = vmatpush.xpose.msra.mxu3 %v1000_v47 }
 0x1a0   :  { %1009 = vmatpush.xpose.msra.mxu3 %v999_v43 }
 0x1a4   :  { %1010 = vmatpush.xpose.msra.mxu3 %v998_v24 }
 0x1a8   :  { %1011 = vmatpush.xpose.msra.mxu3 %v997_v33 }
 0x1ac   :  { %1012 = vmatpush.xpose.msra.mxu3 %v996_v29 }
 0x1b0   :  { %1013 = vmatpush.xpose.msra.mxu3 %v995_v41 }
 0x1b4   :  { %1014 = vmatpush.xpose.msra.mxu3 %v994_v25 }
 0x1b8   :  { %1015 = vmatpush.xpose.msra.mxu3 %v993_v49 }
 0x1bc   :  { %1016 = vmatpush.xpose.msra.mxu3 %v992_v51 }
 0x1c0   :  { %1017 = vmatpush.xpose.msra.mxu3 %v991_v54 }
 0x1c4   :  { %1018 = vmatpush.xpose.msra.mxu3 %v990_v60 }
 0x1c8   :  { %1019 = vmatpush.xpose.msra.mxu3 %v989_v46 }
 0x1cc   :  { %1020 = vmatpush.xpose.msra.mxu3 %v988_v1 }
 0x1d0   :  { %1021 = vmatpush.xpose.msra.mxu3 %v987_v50 }
 0x1d3   :  { %1022 = vmatmul.f32.vlgmr.msra.gmra.mxu3 %v1003_v30 }
 0x256   :  { %v1023_v16 = vpop.f32.mrf.mxu3 }
 0x257   :  { %v1024_v3 = vadd.f32 %v1023_v16, %v1005_v56 }
 0x259   :  { %v1026_v17 = vand.u32 2147483647, %v1024_v3  ;;  %vm1030_vm4 = vcmp.ge.f32.partialorder %v1024_v3, 0.0 }
 0x25b   :  { %v1027_v7 = vsub.f32 0.0, %v1026_v17 }
 0x25d   :  { %v1028_v36 = vmul.f32 1.442695, %v1027_v7 }
 0x25f   :  { %1337 = vpow2.f32 %v1028_v36 }
 0x265   :  { %v1338_v8 = vpop.eup %1337 }
 0x266   :  { %v1032_v5 = vadd.f32 1.0, %v1338_v8  ;;  %v1031_v19 = vsel %vm1030_vm4, 1.0, %v1338_v8 }
 0x268   :  { %1339 = vrcp.f32 %v1032_v5  ;;  %v1044_v20 = vand.u32 2147483648, %v1032_v5  ;;  %v1042_v14 = vand.u32 2147483647, %v1032_v5  ;;  %vm1038_vm2 = vweird.f32 %v1032_v5 }
 0x26a   :  { %v1045_v4 = vor.u32 1.1754944e-38, %v1044_v20  ;;  %vm1043_vm5 = vcmp.eq.f32.partialorder %v1042_v14, 8.507059e+37 }
 0x26e   :  { %v1340_v10 = vpop.eup %1339 }
 0x26f   :  { %v1034_v0 = vmul.f32 %v1340_v10, %v1032_v5  ;;  %vm1039_vm1 = vweird.f32 %v1340_v10 }
 0x270   :  { %vm1040_vm3 = vmor %vm1038_vm2, %vm1039_vm1 }
 0x271   :  { %v1035_v12 = vsub.f32 1.0, %v1034_v0 }
 0x273   :  { %v1036_v11 = vmul.f32 %v1340_v10, %v1035_v12 }
 0x275   :  { %v1037_v15 = vadd.f32 %v1340_v10, %v1036_v11 }
 0x277   :  { %v1041_v53 = vsel %vm1040_vm3, %v1340_v10, %v1037_v15 }
 0x278   :  { %v1046_v9 = vsel %vm1043_vm5, %v1045_v4, %v1041_v53 }
 0x279   :  { %v1047_v58 = vmul.f32 %v1046_v9, %v1031_v19 }
 0x27b   :  { %1048 = vst [vmem:[#allocation3] sm:$0x1] %v1047_v58 }
 0x27c   :  { %1059 = dma.vmem_to_hbm [thread:$0]  %s1055_s4, 16, %s1057_s13, [#allocation4]  }
 0x27d   :  { %1365 = dma.done.wait [#allocation4], 16  }
 0x27e   :  { %1366 = vsyncadd [#allocation4], 4294967280 }
 0x27f   :  { %1064 = vsyncpa [#allocation4], 1 }

</bundles_post_ra>
